<compile_context>
chip_gen: v7x
topology: tpu7x:2x2x1
jax: 0.10.0
libtpu: 0.0.40
codegen_flags: <defaults>
</compile_context>

<pallas_src>
import functools

import jax
import jax.numpy as jnp
import numpy as np
from jax.experimental import pallas as pl
from jax.experimental.pallas import tpu as pltpu


def _round_up(x, m):
    return int((x + m - 1) // m * m)


# ----------------------------------------------------------------------------
# Fused conv-as-matmul kernel:
#   out = [relu]( (A @ W_scaled) + bias [+ residual] )      (bf16 in, f32 acc)
# Grid = (N-blocks, M-blocks, K-blocks); K is the innermost "arbitrary" axis with a
# VMEM f32 accumulator (init at k==0, epilogue+store at k==last).
# ----------------------------------------------------------------------------
@functools.lru_cache(maxsize=None)
def _build_conv_mm_call(M_pad, K_pad, N_pad, tm, tn, tk, relu, has_res):
    def kernel(a_ref, w_ref, b_ref, *rest):
        if has_res:
            r_ref, o_ref, acc_ref = rest
        else:
            o_ref, acc_ref = rest

        @pl.when(pl.program_id(2) == 0)
        def _():
            acc_ref[...] = jnp.zeros_like(acc_ref)

        acc_ref[...] += jnp.dot(a_ref[...], w_ref[...],
                                preferred_element_type=jnp.float32)

        @pl.when(pl.program_id(2) == pl.num_programs(2) - 1)
        def _():
            acc = acc_ref[...] + b_ref[...]
            if has_res:
                acc = acc + r_ref[...].astype(jnp.float32)
            if relu:
                acc = jnp.maximum(acc, 0.0)
            o_ref[...] = acc.astype(o_ref.dtype)

    in_specs = [
        pl.BlockSpec((tm, tk), lambda j, i, k: (i, k)),   # A tile
        pl.BlockSpec((tk, tn), lambda j, i, k: (k, j)),   # W tile (resident over i when K//tk==1)
        pl.BlockSpec((1, tn), lambda j, i, k: (0, j)),    # folded-BN bias
    ]
    if has_res:
        in_specs.append(pl.BlockSpec((tm, tn), lambda j, i, k: (i, j)))  # residual

    return pl.pallas_call(
        kernel,
        out_shape=jax.ShapeDtypeStruct((M_pad, N_pad), jnp.bfloat16),
        grid_spec=pltpu.PrefetchScalarGridSpec(
            num_scalar_prefetch=0,
            grid=(N_pad // tn, M_pad // tm, K_pad // tk),
            in_specs=in_specs,
            out_specs=pl.BlockSpec((tm, tn), lambda j, i, k: (i, j)),
            scratch_shapes=[pltpu.VMEM((tm, tn), jnp.float32)],
        ),
        compiler_params=pltpu.CompilerParams(
            dimension_semantics=("parallel", "parallel", "arbitrary"),
        ),
    )


def conv_bn(x, p, *, stride, padding, relu, residual=None):
    """x: (N,H,W,Cin) NHWC (bf16/f32).  p: folded conv+BN params.  Returns bf16 NHWC."""
    N, H, W, Cin = x.shape
    kh, kw, cout = p["kh"], p["kw"], p["cout"]
    Ho = (H + 2 * padding - kh) // stride + 1
    Wo = (W + 2 * padding - kw) // stride + 1
    M = N * Ho * Wo
    K = kh * kw * Cin

    if kh == 1 and kw == 1 and padding == 0:
        # 1x1 conv: "im2col" is just a (strided) reshape -- no expansion.
        xs = x if stride == 1 else x[:, ::stride, ::stride, :]
        A = xs.reshape(M, Cin)
    else:
        # TODO(synk): for kh/kw>1 the im2col patch matrix is still materialized in HBM
        # (~kh*kw x A-side traffic); an in-kernel tap gather needs element-offset
        # BlockSpecs or manual DMA and is left out here to keep lowering robust.
        xp = jnp.pad(x, ((0, 0), (padding, padding), (padding, padding), (0, 0)))
        patches = [xp[:, i:i + stride * Ho:stride, j:j + stride * Wo:stride, :]
                   for i in range(kh) for j in range(kw)]
        A = jnp.concatenate(patches, axis=-1).reshape(M, K)
    A = A.astype(jnp.bfloat16)

    Wm = p["w"]       # (K_pad0, N_pad) bf16, BN scale folded in
    bm = p["bias"]    # (1, N_pad) f32
    K_pad0, N_pad = Wm.shape

    # K chunking: single block when K fits (weight-resident across the M sweep),
    # otherwise <=2048-wide chunks to bound VMEM (v7x-safe).
    kc = max(1, -(-K_pad0 // 2048))
    tk = _round_up(-(-K_pad0 // kc), 128)
    K_pad = tk * kc
    if K_pad != K_pad0:
        Wm = jnp.pad(Wm, ((0, K_pad - K_pad0), (0, 0)))

    tn = 256 if N_pad % 256 == 0 else 128
    tm = min(512, _round_up(M, 8))
    M_pad = _round_up(M, tm)

    if M_pad != M or K_pad != K:
        A = jnp.pad(A, ((0, M_pad - M), (0, K_pad - K)))

    args = [A, Wm, bm]
    has_res = residual is not None
    if has_res:
        R = residual.reshape(M, cout).astype(jnp.bfloat16)
        if M_pad != M or N_pad != cout:
            R = jnp.pad(R, ((0, M_pad - M), (0, N_pad - cout)))
        args.append(R)

    call = _build_conv_mm_call(M_pad, K_pad, N_pad, tm, tn, tk, bool(relu), has_res)
    out = call(*args)
    if M_pad != M or N_pad != cout:
        out = out[:M, :cout]
    return out.reshape(N, Ho, Wo, cout)


# ----------------------------------------------------------------------------
# 3x3 / stride-2 / pad-1 max-pool: separable (width-max of 3, then height-max of 3),
# each pass a blocked Pallas max kernel over a lane-dense (rows, 128) layout.
# ----------------------------------------------------------------------------
def _max3_kernel(x_ref, o_ref):
    o_ref[...] = jnp.maximum(jnp.maximum(x_ref[0], x_ref[1]), x_ref[2])


def _max3(v0, v1, v2, out_shape):
    T = int(np.prod(v0.shape))
    Tp = _round_up(T, 8 * 128)

    def prep(v):
        f = v.reshape(-1)
        if Tp != T:
            f = jnp.pad(f, (0, Tp - T))
        return f

    stack = jnp.stack([prep(v0), prep(v1), prep(v2)], axis=0).reshape(3, Tp // 128, 128)
    R = Tp // 128
    if R <= 4096:
        tr, Rp = R, R
    else:
        tr = 512
        Rp = _round_up(R, tr)
        if Rp != R:
            stack = jnp.pad(stack, ((0, 0), (0, Rp - R), (0, 0)))

    out = pl.pallas_call(
        _max3_kernel,
        out_shape=jax.ShapeDtypeStruct((Rp, 128), stack.dtype),
        grid_spec=pltpu.PrefetchScalarGridSpec(
            num_scalar_prefetch=0,
            grid=(Rp // tr,),
            in_specs=[pl.BlockSpec((3, tr, 128), lambda i: (0, i, 0))],
            out_specs=pl.BlockSpec((tr, 128), lambda i: (i, 0)),
        ),
        compiler_params=pltpu.CompilerParams(dimension_semantics=("parallel",)),
    )(stack)
    return out.reshape(-1)[:T].reshape(out_shape)


def maxpool_3x3_s2(x):
    """x: (N,H,W,C) NHWC -> (N, floor((H-1)/2)+1, floor((W-1)/2)+1, C)."""
    N, H, W, C = x.shape
    Ho = (H - 1) // 2 + 1
    Wo = (W - 1) // 2 + 1
    xp = jnp.pad(x, ((0, 0), (1, 1), (1, 1), (0, 0)), constant_values=-jnp.inf)
    # width pass (stride-2 along W), full H+2 rows
    vw = [xp[:, :, j:j + 2 * (Wo - 1) + 1:2, :] for j in range(3)]
    tmp = _max3(vw[0], vw[1], vw[2], (N, H + 2, Wo, C))
    # height pass (stride-2 along H)
    vh = [tmp[:, i:i + 2 * (Ho - 1) + 1:2, :, :] for i in range(3)]
    return _max3(vh[0], vh[1], vh[2], (N, Ho, Wo, C))


# ----------------------------------------------------------------------------
# Deterministic synthetic ResNet-50 parameters (BN folded: scale into W, bias kept)
# ----------------------------------------------------------------------------
def _make_conv(key, kh, kw, cin, cout):
    kkey, gkey, bkey = jax.random.split(key, 3)
    std = 1.0 / np.sqrt(kh * kw * cin)
    w = jax.random.normal(kkey, (kh, kw, cin, cout), jnp.float32) * std
    # Synthetic eval-mode BN: running_mean=0, running_var=1, eps=1e-5.
    gamma = 1.0 + 0.01 * jax.random.normal(gkey, (cout,), jnp.float32)
    beta = 0.01 * jax.random.normal(bkey, (cout,), jnp.float32)
    scale = gamma / jnp.sqrt(1.0 + 1e-5)
    bias = beta  # beta - mean * scale with mean = 0

    K = kh * kw * cin
    Kp = _round_up(K, 128)
    Np = _round_up(cout, 128)
    wf = (w * scale).reshape(K, cout)                      # fold BN scale into weights
    wf = jnp.pad(wf, ((0, Kp - K), (0, Np - cout))).astype(jnp.bfloat16)
    bf = jnp.pad(bias, (0, Np - cout)).reshape(1, Np).astype(jnp.float32)
    return {"w": wf, "bias": bf, "kh": kh, "kw": kw, "cin": cin, "cout": cout}


def init_resnet50_params(key):
    keys = iter(jax.random.split(key, 256))
    params = {"conv1": _make_conv(next(keys), 7, 7, 3, 64)}
    cfg = [(64, 3), (128, 4), (256, 6), (512, 3)]
    layers = []
    in_c = 64
    for width, blocks in cfg:
        blks = []
        for b in range(blocks):
            blk = {
                "conv1": _make_conv(next(keys), 1, 1, in_c, width),
                "conv2": _make_conv(next(keys), 3, 3, width, width),
                "conv3": _make_conv(next(keys), 1, 1, width, width * 4),
            }
            if b == 0:
                blk["down"] = _make_conv(next(keys), 1, 1, in_c, width * 4)
            blks.append(blk)
            in_c = width * 4
        layers.append(blks)
    params["layers"] = layers
    return params


# ----------------------------------------------------------------------------
# Forward pass (matches torchvision resnet50 children()[:-2], eval mode)
# ----------------------------------------------------------------------------
def base_forward(params, x_nchw):
    x = jnp.transpose(x_nchw, (0, 2, 3, 1))  # NCHW -> NHWC

    x = conv_bn(x, params["conv1"], stride=2, padding=3, relu=True)
    x = maxpool_3x3_s2(x)

    stage_strides = [1, 2, 2, 2]
    for li, blks in enumerate(params["layers"]):
        for bi, blk in enumerate(blks):
            s = stage_strides[li] if bi == 0 else 1
            identity = x
            out = conv_bn(x, blk["conv1"], stride=1, padding=0, relu=True)
            out = conv_bn(out, blk["conv2"], stride=s, padding=1, relu=True)
            if "down" in blk:
                identity = conv_bn(x, blk["down"], stride=s, padding=0, relu=False)
            # final 1x1 conv + BN bias, residual add, then ReLU -- fused in-kernel
            out = conv_bn(out, blk["conv3"], stride=1, padding=0, relu=True,
                          residual=identity)
            x = out

    return jnp.transpose(x, (0, 3, 1, 2)).astype(jnp.float32)  # NHWC -> NCHW, f32 out


if __name__ == "__main__":
    key = jax.random.PRNGKey(0)
    pkey, xkey = jax.random.split(key)
    params = init_resnet50_params(pkey)

    # Small NCHW input consistent with the module (ImageNet-style 3-channel image).
    x = jax.random.normal(xkey, (2, 3, 32, 32), jnp.float32)

    y = base_forward(params, x)
    y = jax.block_until_ready(y)
    assert y.shape == (2, 2048, 1, 1), y.shape
    assert bool(jnp.all(jnp.isfinite(y)))
    print("KERNEL_OK")
</pallas_src>

<mosaic_0001>
module attributes {stable_mosaic.version = 11 : i64} {
  func.func @kernel(%arg0: i32, %arg1: i32, %arg2: i32, %arg3: memref<512x256xbf16, #tpu.memory_space<vmem>>, %arg4: memref<256x128xbf16, #tpu.memory_space<vmem>>, %arg5: memref<1x128xf32, #tpu.memory_space<vmem>>, %arg6: memref<512x128xbf16, #tpu.memory_space<vmem>>, %arg7: memref<512x128xf32, #tpu.memory_space<vmem>>) attributes {dimension_semantics = [#tpu.dimension_semantics<parallel>, #tpu.dimension_semantics<parallel>, #tpu.dimension_semantics<arbitrary>], iteration_bounds = array<i64: 1, 1, 1>, scalar_prefetch = 0 : i64, scratch_operands = 1 : i64, tpu.core_type = #tpu.core_type<tc>, window_params = [{transform_indices = @transform_0, window_bounds = array<i64: 512, 256>}, {transform_indices = @transform_1, window_bounds = array<i64: 256, 128>}, {transform_indices = @transform_2, window_bounds = array<i64: 1, 128>}, {transform_indices = @transform_3, window_bounds = array<i64: 512, 128>}]} {
    %c0_i32 = arith.constant 0 : i32
    %0 = arith.cmpi eq, %arg2, %c0_i32 : i32
    %1 = arith.extui %0 : i1 to i32
    %c0_i32_0 = arith.constant 0 : i32
    %2 = arith.cmpi ne, %1, %c0_i32_0 : i32
    scf.if %2 {
      %cst_10 = arith.constant 0.000000e+00 : f32
      %12 = vector.broadcast %cst_10 : f32 to vector<512x128xf32>
      %c0_11 = arith.constant 0 : index
      %c0_12 = arith.constant 0 : index
      %13 = vector.load %arg7[%c0_11, %c0_12] : memref<512x128xf32, #tpu.memory_space<vmem>>, vector<512x128xf32>
      tpu.vector_store %arg7[%c0_11, %c0_12], %12 {strides = array<i32>} : memref<512x128xf32, #tpu.memory_space<vmem>>, vector<512x128xf32>,
    } else {
    }
    %c0 = arith.constant 0 : index
    %c0_1 = arith.constant 0 : index
    %3 = vector.load %arg7[%c0, %c0_1] : memref<512x128xf32, #tpu.memory_space<vmem>>, vector<512x128xf32>
    %c0_2 = arith.constant 0 : index
    %c0_3 = arith.constant 0 : index
    %4 = vector.load %arg3[%c0_2, %c0_3] : memref<512x256xbf16, #tpu.memory_space<vmem>>, vector<512x256xbf16>
    %c0_4 = arith.constant 0 : index
    %c0_5 = arith.constant 0 : index
    %5 = vector.load %arg4[%c0_4, %c0_5] : memref<256x128xbf16, #tpu.memory_space<vmem>>, vector<256x128xbf16>
    %cst = arith.constant dense<0.000000e+00> : vector<512x128xf32>
    %6 = tpu.matmul %4, %5, %cst {dimension_numbers = #tpu.dot_dimension_numbers<[1], [0], [0], [1], [0, 0, 1, 1], [], []>} : vector<512x256xbf16>, vector<256x128xbf16>, vector<512x128xf32> -> vector<512x128xf32>
    %7 = arith.addf %3, %6 : vector<512x128xf32>
    %c0_6 = arith.constant 0 : index
    %c0_7 = arith.constant 0 : index
    %8 = vector.load %arg7[%c0_6, %c0_7] : memref<512x128xf32, #tpu.memory_space<vmem>>, vector<512x128xf32>
    tpu.vector_store %arg7[%c0_6, %c0_7], %7 {strides = array<i32>} : memref<512x128xf32, #tpu.memory_space<vmem>>, vector<512x128xf32>,
    %c0_i32_8 = arith.constant 0 : i32
    %9 = arith.cmpi eq, %arg2, %c0_i32_8 : i32
    %10 = arith.extui %9 : i1 to i32
    %c0_i32_9 = arith.constant 0 : i32
    %11 = arith.cmpi ne, %10, %c0_i32_9 : i32
    scf.if %11 {
      %c0_10 = arith.constant 0 : index
      %c0_11 = arith.constant 0 : index
      %12 = vector.load %arg7[%c0_10, %c0_11] : memref<512x128xf32, #tpu.memory_space<vmem>>, vector<512x128xf32>
      %c0_12 = arith.constant 0 : index
      %c0_13 = arith.constant 0 : index
      %13 = vector.load %arg5[%c0_12, %c0_13] : memref<1x128xf32, #tpu.memory_space<vmem>>, vector<1x128xf32>
      %14 = vector.broadcast %13 : vector<1x128xf32> to vector<512x128xf32>
      %15 = arith.addf %12, %14 : vector<512x128xf32>
      %cst_14 = arith.constant 0.000000e+00 : f32
      %16 = vector.broadcast %cst_14 : f32 to vector<512x128xf32>
      %17 = arith.maximumf %15, %16 : vector<512x128xf32>
      %18 = arith.truncf %17 : vector<512x128xf32> to vector<512x128xbf16>
      %c0_15 = arith.constant 0 : index
      %c0_16 = arith.constant 0 : index
      %19 = vector.load %arg6[%c0_15, %c0_16] : memref<512x128xbf16, #tpu.memory_space<vmem>>, vector<512x128xbf16>
      tpu.vector_store %arg6[%c0_15, %c0_16], %18 {strides = array<i32>} : memref<512x128xbf16, #tpu.memory_space<vmem>>, vector<512x128xbf16>,
    } else {
    }
    return
  }
  func.func @transform_0(%arg0: i32, %arg1: i32, %arg2: i32) -> (i32, i32) {
    %c0_i32 = arith.constant 0 : i32
    return %arg1, %arg2 : i32, i32
  }
  func.func @transform_1(%arg0: i32, %arg1: i32, %arg2: i32) -> (i32, i32) {
    %c0_i32 = arith.constant 0 : i32
    return %arg2, %arg0 : i32, i32
  }
  func.func @transform_2(%arg0: i32, %arg1: i32, %arg2: i32) -> (i32, i32) {
    %c0_i32 = arith.constant 0 : i32
    %c0_i32_0 = arith.constant 0 : i32
    return %c0_i32, %arg0 : i32, i32
  }
  func.func @transform_3(%arg0: i32, %arg1: i32, %arg2: i32) -> (i32, i32) {
    %c0_i32 = arith.constant 0 : i32
    return %arg1, %arg0 : i32, i32
  }
}

</mosaic_0001>

<bundles_post_ra>
// kernel: tpu_custom_call.1
= control target key start
LH: loop header
LB: loop body
LE: loop exit
PB: predicated region body
PF: predicated region fallthrough
CT: control target
= control target key end

     0   :  { %8 = vsyncpa [#allocation4], 0  ;;  %s2440_s0 = inlined_call_operand.hbm [shape: bf16[512,256], index: 0, kind: input, shape index: {}]   ;;  %s2441_s1 = inlined_call_operand.hbm [shape: bf16[256,128], index: 1, kind: input, shape index: {}]   ;;  %s2442_s2 = inlined_call_operand.vmem [shape: f32[1,128], index: 2, kind: input, shape index: {}]   ;;  %s2443_s3 = inlined_call_operand.hbm [shape: bf16[512,128], index: 3, kind: output, shape index: {}]  }
   0x1   :  { %9 = vsyncpa [#allocation7], 0 }
   0x2   :  { %10 = vsyncpa [#allocation5], 0  ;;  %s2269_s12 = smov [#allocation3]   ;;  %s2197_s16 = scalar_lea.hbm %s2440_s0, 8192 }
   0x3   :  { %s16_s13 = sshll.u32 %s2269_s12, 4  ;;  %p2198_p0 = scmp.ne.s32.totalorder %s2440_s0, %s2197_s16  ;;  %s17_s13 = int_to_ptr.vmem [resolvable:$true] %s16_s13 }
   0x4   :  { %p2201_p1 = scmp.lt.u32.totalorder %s2197_s16, %s2440_s0 }
   0x6   :  { %p2203_p2 = pnand %p2201_p1, %p2198_p0 }
   0x8   :  { %2206 = shalt.err (!%p2203_p2)
}
   0x9   :  { %s2207_s21 = scalar_lea.vmem %s17_s13, 8192  ;;  %p2212_p4 = scmp.lt.s32.totalorder %s17_s13, %s17_s13 }
   0xa   :  { %p2208_p3 = scmp.ne.s32.totalorder %s17_s13, %s2207_s21  ;;  %p2213_p5 = scmp.lt.s32.totalorder %s2207_s21, %s2207_s21 }
   0xc   :  { %p2214_p6 = por %p2213_p5, %p2212_p4 }
   0xe   :  { %p2215_p7 = pnand %p2214_p6, %p2208_p3 }
  0x10   :  { %2218 = shalt.err (!%p2215_p7)
}
  0x11   :  { %s2270_s22 = smov 128   ;;  %s2271_s23 = smov 8  }
  0x12   :  { %22 = dma.hbm_to_vmem [thread:$0]  %s2440_s0, 8192, %s17_s13, [#allocation4], %s2270_s22, %s2270_s22, %s2271_s23  }
  0x13   :  { %s2272_s26 = smov [#allocation6]   ;;  %s2219_s30 = scalar_lea.hbm %s2441_s1, 2048 }
  0x14   :  { %s28_s27 = sshll.u32 %s2272_s26, 4  ;;  %p2220_p8 = scmp.ne.s32.totalorder %s2441_s1, %s2219_s30  ;;  %s29_s27 = int_to_ptr.vmem [resolvable:$true] %s28_s27 }
  0x15   :  { %p2223_p9 = scmp.lt.u32.totalorder %s2219_s30, %s2441_s1 }
  0x17   :  { %p2225_p10 = pnand %p2223_p9, %p2220_p8 }
  0x19   :  { %2228 = shalt.err (!%p2225_p10)
}
  0x1a   :  { %s2229_s8 = scalar_lea.vmem %s29_s27, 2048  ;;  %p2234_p12 = scmp.lt.s32.totalorder %s29_s27, %s29_s27 }
  0x1b   :  { %p2230_p11 = scmp.ne.s32.totalorder %s29_s27, %s2229_s8  ;;  %p2235_p13 = scmp.lt.s32.totalorder %s2229_s8, %s2229_s8 }
  0x1d   :  { %p2236_p0 = por %p2235_p13, %p2234_p12 }
  0x1f   :  { %p2237_p1 = pnand %p2236_p0, %p2230_p11 }
  0x21   :  { %2240 = shalt.err (!%p2237_p1)
}
  0x22   :  { %s2273_s0 = smov 64   ;;  %s2274_s9 = smov 4  }
  0x23   :  { %34 = dma.hbm_to_vmem [thread:$0]  %s2441_s1, 2048, %s29_s27, [#allocation7], %s2273_s0, %s2273_s0, %s2274_s9  }
  0x24   :  { %2263 = dma.done.wait [#allocation4], 8192  }
  0x25   :  { %2264 = vsyncadd [#allocation4], 4294959104 }
  0x26   :  { %2265 = dma.done.wait [#allocation7], 2048  }
  0x27   :  { %2266 = vsyncadd [#allocation7], 4294965248  ;;  %v2275_v0 = vmov 0   ;;  %v2085_v1 = vld [vmem:[#allocation6] sm:$0xff]   ;;  %v2086_v2 = vld [vmem:[#allocation6 + $0x8] sm:$0xff]  }
  0x28   :  { %688 = vmatprep.subr.bf16.mxu0 %v2275_v0  ;;  %2045 = vmatprep.subr.bf16.mxu1 %v2275_v0  ;;  %v2087_v3 = vld [vmem:[#allocation6 + $0x10] sm:$0xff]   ;;  %v2088_v4 = vld [vmem:[#allocation6 + $0x18] sm:$0xff]   ;;  %v2089_v5 = vld [vmem:[#allocation6 + $0x20] sm:$0xff]  }
  0x29   :  { %689 = vmatpush1.bf16.msra.mxu0 %v2085_v1  ;;  %2061 = vmatpush1.bf16.msra.mxu1 %v2085_v1  ;;  %v2103_v6 = vld [vmem:[#allocation3 + $0x4] ss:$8 sps:$4 sm:$0xff]   ;;  %v2091_v9 = vld [vmem:[#allocation6 + $0x30] sm:$0xff]   ;;  %v2092_v10 = vld [vmem:[#allocation6 + $0x38] sm:$0xff]  }
  0x2a   :  { %690 = vmatprep.subr.bf16.mxu0 %v2275_v0  ;;  %2046 = vmatprep.subr.bf16.mxu1 %v2275_v0  ;;  %v2090_v7 = vld [vmem:[#allocation6 + $0x28] sm:$0xff]   ;;  %v2093_v11 = vld [vmem:[#allocation6 + $0x40] sm:$0xff]   ;;  %v2095_v13 = vld [vmem:[#allocation6 + $0x50] sm:$0xff]  }
  0x2b   :  { %v2106_v8 = vld [vmem:[#allocation3 + $0x104] ss:$8 sps:$4 sm:$0xff]   ;;  %720 = vmatprep.mubr.bf16.mxu0 %v2103_v6  ;;  %v2096_v14 = vld [vmem:[#allocation6 + $0x58] sm:$0xff]   ;;  %v2099_v17 = vld [vmem:[#allocation6 + $0x70] sm:$0xff]  }
  0x2c   :  { %848 = vmatprep.mubr.bf16.mxu1 %v2106_v8  ;;  %v2094_v12 = vld [vmem:[#allocation6 + $0x48] sm:$0xff]   ;;  %v2097_v15 = vld [vmem:[#allocation6 + $0x60] sm:$0xff]   ;;  %v2100_v18 = vld [vmem:[#allocation6 + $0x78] sm:$0xff]  }
  0x2d   :  { %691 = vmatpush1.bf16.msra.mxu0 %v2086_v2  ;;  %2062 = vmatpush1.bf16.msra.mxu1 %v2086_v2  ;;  %v2098_v16 = vld [vmem:[#allocation6 + $0x68] sm:$0xff]   ;;  %v2107_v21 = vld [vmem:[#allocation3 + $0x14] ss:$8 sps:$4 sm:$0xff]   ;;  %v2111_v23 = vld [vmem:[#allocation3 + $0x10] ss:$8 sps:$4 sm:$0xff]  }
  0x2e   :  { %692 = vmatprep.subr.bf16.mxu0 %v2275_v0  ;;  %2047 = vmatprep.subr.bf16.mxu1 %v2275_v0  ;;  %v2101_v19 = vld [vmem:[#allocation3] ss:$8 sps:$4 sm:$0xff]   ;;  %v2109_v22 = vld [vmem:[#allocation3 + $0x114] ss:$8 sps:$4 sm:$0xff]   ;;  %v2112_v24 = vld [vmem:[#allocation3 + $0x110] ss:$8 sps:$4 sm:$0xff]  }
  0x2f   :  { %v2104_v20 = vld [vmem:[#allocation3 + $0x100] ss:$8 sps:$4 sm:$0xff]   ;;  %v2113_v25 = vld [vmem:[#allocation3 + $0x24] ss:$8 sps:$4 sm:$0xff]   ;;  %v2119_v29 = vld [vmem:[#allocation3 + $0x34] ss:$8 sps:$4 sm:$0xff]  }
  0x30   :  { %v2115_v26 = vld [vmem:[#allocation3 + $0x124] ss:$8 sps:$4 sm:$0xff]   ;;  %v2117_v27 = vld [vmem:[#allocation3 + $0x20] ss:$8 sps:$4 sm:$0xff]   ;;  %v2121_v30 = vld [vmem:[#allocation3 + $0x134] ss:$8 sps:$4 sm:$0xff]  }
  0x31   :  { %693 = vmatpush1.bf16.msra.mxu0 %v2087_v3  ;;  %2063 = vmatpush1.bf16.msra.mxu1 %v2087_v3  ;;  %v2118_v28 = vld [vmem:[#allocation3 + $0x120] ss:$8 sps:$4 sm:$0xff]   ;;  %v2123_v31 = vld [vmem:[#allocation3 + $0x30] ss:$8 sps:$4 sm:$0xff]   ;;  %v2125_v33 = vld [vmem:[#allocation3 + $0x44] ss:$8 sps:$4 sm:$0xff]  }
  0x32   :  { %694 = vmatprep.subr.bf16.mxu0 %v2275_v0  ;;  %2048 = vmatprep.subr.bf16.mxu1 %v2275_v0  ;;  %v2124_v32 = vld [vmem:[#allocation3 + $0x130] ss:$8 sps:$4 sm:$0xff]   ;;  %v2127_v34 = vld [vmem:[#allocation3 + $0x144] ss:$8 sps:$4 sm:$0xff]   ;;  %v2129_v35 = vld [vmem:[#allocation3 + $0x40] ss:$8 sps:$4 sm:$0xff]  }
  0x33   :  { %v2130_v36 = vld [vmem:[#allocation3 + $0x140] ss:$8 sps:$4 sm:$0xff]   ;;  %v2131_v37 = vld [vmem:[#allocation3 + $0x54] ss:$8 sps:$4 sm:$0xff]   ;;  %v2135_v39 = vld [vmem:[#allocation3 + $0x50] ss:$8 sps:$4 sm:$0xff]  }
  0x34   :  { %v2133_v38 = vld [vmem:[#allocation3 + $0x154] ss:$8 sps:$4 sm:$0xff]   ;;  %v2136_v40 = vld [vmem:[#allocation3 + $0x150] ss:$8 sps:$4 sm:$0xff]   ;;  %v2137_v41 = vld [vmem:[#allocation3 + $0x64] ss:$8 sps:$4 sm:$0xff]  }
  0x35   :  { %695 = vmatpush1.bf16.msra.mxu0 %v2088_v4  ;;  %2064 = vmatpush1.bf16.msra.mxu1 %v2088_v4  ;;  %v2139_v42 = vld [vmem:[#allocation3 + $0x164] ss:$8 sps:$4 sm:$0xff]   ;;  %v2141_v43 = vld [vmem:[#allocation3 + $0x60] ss:$8 sps:$4 sm:$0xff]   ;;  %v2143_v45 = vld [vmem:[#allocation3 + $0x74] ss:$8 sps:$4 sm:$0xff]  }
  0x36   :  { %696 = vmatprep.subr.bf16.mxu0 %v2275_v0  ;;  %2049 = vmatprep.subr.bf16.mxu1 %v2275_v0  ;;  %v2142_v44 = vld [vmem:[#allocation3 + $0x160] ss:$8 sps:$4 sm:$0xff]   ;;  %v2145_v46 = vld [vmem:[#allocation3 + $0x174] ss:$8 sps:$4 sm:$0xff]   ;;  %v2147_v47 = vld [vmem:[#allocation3 + $0x70] ss:$8 sps:$4 sm:$0xff]  }
  0x37   :  { %v2148_v48 = vld [vmem:[#allocation3 + $0x170] ss:$8 sps:$4 sm:$0xff]   ;;  %v2149_v49 = vld [vmem:[#allocation3 + $0x84] ss:$8 sps:$4 sm:$0xff]   ;;  %v2153_v51 = vld [vmem:[#allocation3 + $0x80] ss:$8 sps:$4 sm:$0xff]  }
  0x38   :  { %v2151_v50 = vld [vmem:[#allocation3 + $0x184] ss:$8 sps:$4 sm:$0xff]   ;;  %v2154_v52 = vld [vmem:[#allocation3 + $0x180] ss:$8 sps:$4 sm:$0xff]   ;;  %v2155_v53 = vld [vmem:[#allocation3 + $0x94] ss:$8 sps:$4 sm:$0xff]  }
  0x39   :  { %697 = vmatpush1.bf16.msra.mxu0 %v2089_v5  ;;  %2065 = vmatpush1.bf16.msra.mxu1 %v2089_v5  ;;  %v2157_v54 = vld [vmem:[#allocation3 + $0x194] ss:$8 sps:$4 sm:$0xff]   ;;  %v2159_v55 = vld [vmem:[#allocation3 + $0x90] ss:$8 sps:$4 sm:$0xff]   ;;  %v2161_v57 = vld [vmem:[#allocation3 + $0xa4] ss:$8 sps:$4 sm:$0xff]  }
  0x3a   :  { %698 = vmatprep.subr.bf16.mxu0 %v2275_v0  ;;  %2050 = vmatprep.subr.bf16.mxu1 %v2275_v0  ;;  %v2160_v56 = vld [vmem:[#allocation3 + $0x190] ss:$8 sps:$4 sm:$0xff]   ;;  %v2163_v58 = vld [vmem:[#allocation3 + $0x1a4] ss:$8 sps:$4 sm:$0xff]   ;;  %v2165_v59 = vld [vmem:[#allocation3 + $0xa0] ss:$8 sps:$4 sm:$0xff]  }
  0x3b   :  { %v2166_v60 = vld [vmem:[#allocation3 + $0x1a0] ss:$8 sps:$4 sm:$0xff]   ;;  %v2167_v61 = vld [vmem:[#allocation3 + $0xb4] ss:$8 sps:$4 sm:$0xff]   ;;  %v2171_v63 = vld [vmem:[#allocation3 + $0xb0] ss:$8 sps:$4 sm:$0xff]  }
  0x3c   :  { %v2169_v62 = vld [vmem:[#allocation3 + $0x1b4] ss:$8 sps:$4 sm:$0xff]   ;;  %v2173_v1 = vld [vmem:[#allocation3 + $0xc4] ss:$8 sps:$4 sm:$0xff]   ;;  %v2177_v3 = vld [vmem:[#allocation3 + $0xc0] ss:$8 sps:$4 sm:$0xff]  }
  0x3d   :  { %699 = vmatpush1.bf16.msra.mxu0 %v2090_v7  ;;  %2066 = vmatpush1.bf16.msra.mxu1 %v2090_v7  ;;  %v2175_v2 = vld [vmem:[#allocation3 + $0x1c4] ss:$8 sps:$4 sm:$0xff]   ;;  %v2178_v4 = vld [vmem:[#allocation3 + $0x1c0] ss:$8 sps:$4 sm:$0xff]   ;;  %v2179_v5 = vld [vmem:[#allocation3 + $0xd4] ss:$8 sps:$4 sm:$0xff]  }
  0x3e   :  { %700 = vmatprep.subr.bf16.mxu0 %v2275_v0  ;;  %2051 = vmatprep.subr.bf16.mxu1 %v2275_v0  ;;  %v2181_v6 = vld [vmem:[#allocation3 + $0x1d4] ss:$8 sps:$4 sm:$0xff]   ;;  %v2183_v7 = vld [vmem:[#allocation3 + $0xd0] ss:$8 sps:$4 sm:$0xff]  }
  0x3f   :  { %v2184_v8 = vld [vmem:[#allocation3 + $0x1d0] ss:$8 sps:$4 sm:$0xff]  }
  0x41   :  { %701 = vmatpush1.bf16.msra.mxu0 %v2091_v9  ;;  %2067 = vmatpush1.bf16.msra.mxu1 %v2091_v9  ;;  %v2185_v9 = vld [vmem:[#allocation3 + $0xe4] ss:$8 sps:$4 sm:$0xff]  }
  0x42   :  { %702 = vmatprep.subr.bf16.mxu0 %v2275_v0  ;;  %2052 = vmatprep.subr.bf16.mxu1 %v2275_v0 }
  0x45   :  { %703 = vmatpush1.bf16.msra.mxu0 %v2092_v10  ;;  %2068 = vmatpush1.bf16.msra.mxu1 %v2092_v10  ;;  %v2187_v10 = vld [vmem:[#allocation3 + $0x1e4] ss:$8 sps:$4 sm:$0xff]  }
  0x46   :  { %704 = vmatprep.subr.bf16.mxu0 %v2275_v0  ;;  %2053 = vmatprep.subr.bf16.mxu1 %v2275_v0 }
  0x49   :  { %705 = vmatpush1.bf16.msra.mxu0 %v2093_v11  ;;  %2069 = vmatpush1.bf16.msra.mxu1 %v2093_v11  ;;  %v2189_v11 = vld [vmem:[#allocation3 + $0xe0] ss:$8 sps:$4 sm:$0xff]  }
  0x4a   :  { %706 = vmatprep.subr.bf16.mxu0 %v2275_v0  ;;  %2054 = vmatprep.subr.bf16.mxu1 %v2275_v0 }
  0x4d   :  { %707 = vmatpush1.bf16.msra.mxu0 %v2094_v12  ;;  %2070 = vmatpush1.bf16.msra.mxu1 %v2094_v12  ;;  %v2190_v12 = vld [vmem:[#allocation3 + $0x1e0] ss:$8 sps:$4 sm:$0xff]  }
  0x4e   :  { %708 = vmatprep.subr.bf16.mxu0 %v2275_v0  ;;  %2055 = vmatprep.subr.bf16.mxu1 %v2275_v0 }
  0x51   :  { %709 = vmatpush1.bf16.msra.mxu0 %v2095_v13  ;;  %2071 = vmatpush1.bf16.msra.mxu1 %v2095_v13  ;;  %v2191_v13 = vld [vmem:[#allocation3 + $0xf4] ss:$8 sps:$4 sm:$0xff]  }
  0x52   :  { %710 = vmatprep.subr.bf16.mxu0 %v2275_v0  ;;  %2056 = vmatprep.subr.bf16.mxu1 %v2275_v0 }
  0x55   :  { %711 = vmatpush1.bf16.msra.mxu0 %v2096_v14  ;;  %2072 = vmatpush1.bf16.msra.mxu1 %v2096_v14  ;;  %v2193_v14 = vld [vmem:[#allocation3 + $0x1f4] ss:$8 sps:$4 sm:$0xff]  }
  0x56   :  { %712 = vmatprep.subr.bf16.mxu0 %v2275_v0  ;;  %2057 = vmatprep.subr.bf16.mxu1 %v2275_v0 }
  0x59   :  { %713 = vmatpush1.bf16.msra.mxu0 %v2097_v15  ;;  %2073 = vmatpush1.bf16.msra.mxu1 %v2097_v15  ;;  %v2195_v15 = vld [vmem:[#allocation3 + $0xf0] ss:$8 sps:$4 sm:$0xff]  }
  0x5a   :  { %714 = vmatprep.subr.bf16.mxu0 %v2275_v0  ;;  %2058 = vmatprep.subr.bf16.mxu1 %v2275_v0 }
  0x5d   :  { %715 = vmatpush1.bf16.msra.mxu0 %v2098_v16  ;;  %2074 = vmatpush1.bf16.msra.mxu1 %v2098_v16  ;;  %v2196_v16 = vld [vmem:[#allocation3 + $0x1f0] ss:$8 sps:$4 sm:$0xff]  }
  0x5e   :  { %716 = vmatprep.subr.bf16.mxu0 %v2275_v0  ;;  %2059 = vmatprep.subr.bf16.mxu1 %v2275_v0 }
  0x61   :  { %717 = vmatpush1.bf16.msra.mxu0 %v2099_v17  ;;  %2075 = vmatpush1.bf16.msra.mxu1 %v2099_v17  ;;  %v2359_v17 = vld [vmem:[%s2442_s2] ss:$0 sm:$0xff]  ;;  %s2276_s2 = smov [#allocation8]  }
  0x62   :  { %718 = vmatprep.subr.bf16.mxu0 %v2275_v0  ;;  %2060 = vmatprep.subr.bf16.mxu1 %v2275_v0  ;;  %v2172_v0 = vld [vmem:[#allocation3 + $0x1b0] ss:$8 sps:$4 sm:$0xff]   ;;  %s1632_s13 = sshll.u32 %s2276_s2, 4  ;;  %s1633_s13 = int_to_ptr.vmem [resolvable:$true] %s1632_s13 }
  0x63   :  { %s2241_s14 = scalar_lea.vmem %s1633_s13, 4096  ;;  %p2246_p3 = scmp.lt.s32.totalorder %s1633_s13, %s1633_s13 }
  0x64   :  { %p2242_p2 = scmp.ne.s32.totalorder %s1633_s13, %s2241_s14  ;;  %p2247_p4 = scmp.lt.s32.totalorder %s2241_s14, %s2241_s14 }
  0x65   :  { %719 = vmatpush1.bf16.msra.mxu0 %v2100_v18  ;;  %2076 = vmatpush1.bf16.msra.mxu1 %v2100_v18 }
  0x66   :  { %p2248_p5 = por %p2247_p4, %p2246_p3 }
  0x68   :  { %721 = vmatmul.mubr.bf16.vlgmr.msra.gmra.mrb[0].mxu0 %v2101_v19  ;;  %849 = vmatmul.mubr.bf16.vlgmr.msra.gmra.mrb[0].mxu1 %v2104_v20  ;;  %p2249_p6 = pnand %p2248_p5, %p2242_p2 }
  0x69   :  { %728 = vmatprep.mubr.bf16.mxu0 %v2107_v21  ;;  %856 = vmatprep.mubr.bf16.mxu1 %v2109_v22 }
  0x70   :  { %729 = vmatmul.mubr.bf16.gmra.mrb[4].mxu0 %v2111_v23  ;;  %857 = vmatmul.mubr.bf16.gmra.mrb[4].mxu1 %v2112_v24 }
  0x71   :  { %736 = vmatprep.mubr.bf16.mxu0 %v2113_v25  ;;  %864 = vmatprep.mubr.bf16.mxu1 %v2115_v26 }
  0x78   :  { %737 = vmatmul.mubr.bf16.gmra.mrb[8].mxu0 %v2117_v27  ;;  %865 = vmatmul.mubr.bf16.gmra.mrb[8].mxu1 %v2118_v28 }
  0x79   :  { %744 = vmatprep.mubr.bf16.mxu0 %v2119_v29  ;;  %872 = vmatprep.mubr.bf16.mxu1 %v2121_v30 }
  0x80   :  { %745 = vmatmul.mubr.bf16.gmra.mrb[12].mxu0 %v2123_v31  ;;  %873 = vmatmul.mubr.bf16.gmra.mrb[12].mxu1 %v2124_v32 }
  0x81   :  { %752 = vmatprep.mubr.bf16.mxu0 %v2125_v33  ;;  %880 = vmatprep.mubr.bf16.mxu1 %v2127_v34 }
  0x88   :  { %753 = vmatmul.mubr.bf16.gmra.mrb[16].mxu0 %v2129_v35  ;;  %881 = vmatmul.mubr.bf16.gmra.mrb[16].mxu1 %v2130_v36 }
  0x89   :  { %760 = vmatprep.mubr.bf16.mxu0 %v2131_v37  ;;  %888 = vmatprep.mubr.bf16.mxu1 %v2133_v38 }
  0x90   :  { %761 = vmatmul.mubr.bf16.gmra.mrb[20].mxu0 %v2135_v39  ;;  %889 = vmatmul.mubr.bf16.gmra.mrb[20].mxu1 %v2136_v40 }
  0x91   :  { %768 = vmatprep.mubr.bf16.mxu0 %v2137_v41  ;;  %896 = vmatprep.mubr.bf16.mxu1 %v2139_v42 }
  0x98   :  { %769 = vmatmul.mubr.bf16.gmra.mrb[24].mxu0 %v2141_v43  ;;  %897 = vmatmul.mubr.bf16.gmra.mrb[24].mxu1 %v2142_v44 }
  0x99   :  { %776 = vmatprep.mubr.bf16.mxu0 %v2143_v45  ;;  %904 = vmatprep.mubr.bf16.mxu1 %v2145_v46 }
  0xa0   :  { %777 = vmatmul.mubr.bf16.gmra.mrb[28].mxu0 %v2147_v47  ;;  %905 = vmatmul.mubr.bf16.gmra.mrb[28].mxu1 %v2148_v48 }
  0xa1   :  { %784 = vmatprep.mubr.bf16.mxu0 %v2149_v49  ;;  %912 = vmatprep.mubr.bf16.mxu1 %v2151_v50 }
  0xa8   :  { %785 = vmatmul.mubr.bf16.gmra.mrb[32].mxu0 %v2153_v51  ;;  %913 = vmatmul.mubr.bf16.gmra.mrb[32].mxu1 %v2154_v52 }
  0xa9   :  { %792 = vmatprep.mubr.bf16.mxu0 %v2155_v53  ;;  %920 = vmatprep.mubr.bf16.mxu1 %v2157_v54 }
  0xb0   :  { %793 = vmatmul.mubr.bf16.gmra.mrb[36].mxu0 %v2159_v55  ;;  %921 = vmatmul.mubr.bf16.gmra.mrb[36].mxu1 %v2160_v56 }
  0xb1   :  { %800 = vmatprep.mubr.bf16.mxu0 %v2161_v57  ;;  %928 = vmatprep.mubr.bf16.mxu1 %v2163_v58 }
  0xb8   :  { %801 = vmatmul.mubr.bf16.gmra.mrb[40].mxu0 %v2165_v59  ;;  %929 = vmatmul.mubr.bf16.gmra.mrb[40].mxu1 %v2166_v60 }
  0xb9   :  { %808 = vmatprep.mubr.bf16.mxu0 %v2167_v61  ;;  %936 = vmatprep.mubr.bf16.mxu1 %v2169_v62 }
  0xc0   :  { %809 = vmatmul.mubr.bf16.gmra.mrb[44].mxu0 %v2171_v63  ;;  %937 = vmatmul.mubr.bf16.gmra.mrb[44].mxu1 %v2172_v0 }
  0xc1   :  { %816 = vmatprep.mubr.bf16.mxu0 %v2173_v1  ;;  %944 = vmatprep.mubr.bf16.mxu1 %v2175_v2 }
  0xc8   :  { %817 = vmatmul.mubr.bf16.gmra.mrb[48].mxu0 %v2177_v3  ;;  %945 = vmatmul.mubr.bf16.gmra.mrb[48].mxu1 %v2178_v4 }
  0xc9   :  { %824 = vmatprep.mubr.bf16.mxu0 %v2179_v5  ;;  %952 = vmatprep.mubr.bf16.mxu1 %v2181_v6 }
  0xd0   :  { %825 = vmatmul.mubr.bf16.gmra.mrb[52].mxu0 %v2183_v7  ;;  %953 = vmatmul.mubr.bf16.gmra.mrb[52].mxu1 %v2184_v8 }
  0xd1   :  { %832 = vmatprep.mubr.bf16.mxu0 %v2185_v9  ;;  %960 = vmatprep.mubr.bf16.mxu1 %v2187_v10 }
  0xd8   :  { %833 = vmatmul.mubr.bf16.gmra.mrb[56].mxu0 %v2189_v11  ;;  %961 = vmatmul.mubr.bf16.gmra.mrb[56].mxu1 %v2190_v12 }
  0xd9   :  { %840 = vmatprep.mubr.bf16.mxu0 %v2191_v13  ;;  %968 = vmatprep.mubr.bf16.mxu1 %v2193_v14 }
  0xe0   :  { %841 = vmatmul.mubr.bf16.gmra.mrb[60].mxu0 %v2195_v15  ;;  %969 = vmatmul.mubr.bf16.gmra.mrb[60].mxu1 %v2196_v16 }
 0x13b   :  { %v722_v18 = vpop.f32.mrb[0].mxu0  ;;  %v850_v19 = vpop.f32.mrb[0].mxu1 }
 0x13c   :  { %v1179_v20 = vadd.f32 %v2359_v17, %v722_v18  ;;  %v1211_v21 = vadd.f32 %v2359_v17, %v850_v19  ;;  %v724_v22 = vpop.f32.mrb[1].mxu0  ;;  %v852_v23 = vpop.f32.mrb[1].mxu1 }
 0x13d   :  { %v725_v24 = vpop.f32.mrb[2].mxu0  ;;  %v853_v25 = vpop.f32.mrb[2].mxu1 }
 0x13e   :  { %v1180_v26 = vadd.f32 %v2359_v17, %v725_v24  ;;  %v1212_v27 = vadd.f32 %v2359_v17, %v853_v25  ;;  %v727_v28 = vpop.f32.mrb[3].mxu0  ;;  %v855_v29 = vpop.f32.mrb[3].mxu1  ;;  %v1243_v30 = vmax.f32 %v1179_v20, 0.0  ;;  %v1275_v31 = vmax.f32 %v1211_v21, 0.0 }
 0x140   :  { %v1244_v32 = vmax.f32 %v1180_v26, 0.0  ;;  %v1276_v33 = vmax.f32 %v1212_v27, 0.0 }
 0x142   :  { %v1857_v34 = vpack.c.bf16 %v1244_v32, %v1243_v30  ;;  %v1937_v35 = vpack.c.bf16 %v1276_v33, %v1275_v31 }
 0x143   :  { %v730_v36 = vpop.f32.mrb[4].mxu0  ;;  %v858_v37 = vpop.f32.mrb[4].mxu1 }
 0x144   :  { %1858 = vst [vmem:[#allocation8] sm:$0xff] %v1857_v34   ;;  %2029 = vst [vmem:[#allocation8 + $0x80] sm:$0xff] %v1937_v35   ;;  %v1181_v38 = vadd.f32 %v2359_v17, %v730_v36  ;;  %v1213_v39 = vadd.f32 %v2359_v17, %v858_v37  ;;  %v732_v40 = vpop.f32.mrb[5].mxu0  ;;  %v860_v41 = vpop.f32.mrb[5].mxu1 }
 0x145   :  { %v733_v42 = vpop.f32.mrb[6].mxu0  ;;  %v861_v43 = vpop.f32.mrb[6].mxu1 }
 0x146   :  { %v1182_v44 = vadd.f32 %v2359_v17, %v733_v42  ;;  %v1214_v45 = vadd.f32 %v2359_v17, %v861_v43  ;;  %v735_v46 = vpop.f32.mrb[7].mxu0  ;;  %v863_v47 = vpop.f32.mrb[7].mxu1  ;;  %v1245_v48 = vmax.f32 %v1181_v38, 0.0  ;;  %v1277_v49 = vmax.f32 %v1213_v39, 0.0 }
 0x148   :  { %v1246_v50 = vmax.f32 %v1182_v44, 0.0  ;;  %v1278_v51 = vmax.f32 %v1214_v45, 0.0 }
 0x14a   :  { %v1862_v52 = vpack.c.bf16 %v1246_v50, %v1245_v48  ;;  %v1942_v53 = vpack.c.bf16 %v1278_v51, %v1277_v49 }
 0x14b   :  { %v738_v54 = vpop.f32.mrb[8].mxu0  ;;  %v866_v55 = vpop.f32.mrb[8].mxu1 }
 0x14c   :  { %2014 = vst [vmem:[#allocation8 + $0x8] sm:$0xff] %v1862_v52   ;;  %2030 = vst [vmem:[#allocation8 + $0x88] sm:$0xff] %v1942_v53   ;;  %v1183_v56 = vadd.f32 %v2359_v17, %v738_v54  ;;  %v1215_v57 = vadd.f32 %v2359_v17, %v866_v55  ;;  %v740_v58 = vpop.f32.mrb[9].mxu0  ;;  %v868_v59 = vpop.f32.mrb[9].mxu1 }
 0x14d   :  { %v741_v60 = vpop.f32.mrb[10].mxu0  ;;  %v869_v61 = vpop.f32.mrb[10].mxu1 }
 0x14e   :  { %v1184_v62 = vadd.f32 %v2359_v17, %v741_v60  ;;  %v1216_v63 = vadd.f32 %v2359_v17, %v869_v61  ;;  %v743_v0 = vpop.f32.mrb[11].mxu0  ;;  %v871_v1 = vpop.f32.mrb[11].mxu1  ;;  %v1247_v2 = vmax.f32 %v1183_v56, 0.0  ;;  %v1279_v3 = vmax.f32 %v1215_v57, 0.0 }
 0x150   :  { %v1248_v4 = vmax.f32 %v1184_v62, 0.0  ;;  %v1280_v5 = vmax.f32 %v1216_v63, 0.0 }
 0x152   :  { %v1867_v6 = vpack.c.bf16 %v1248_v4, %v1247_v2  ;;  %v1947_v7 = vpack.c.bf16 %v1280_v5, %v1279_v3 }
 0x153   :  { %v746_v8 = vpop.f32.mrb[12].mxu0  ;;  %v874_v9 = vpop.f32.mrb[12].mxu1 }
 0x154   :  { %2015 = vst [vmem:[#allocation8 + $0x10] sm:$0xff] %v1867_v6   ;;  %2031 = vst [vmem:[#allocation8 + $0x90] sm:$0xff] %v1947_v7   ;;  %v1185_v10 = vadd.f32 %v2359_v17, %v746_v8  ;;  %v1217_v11 = vadd.f32 %v2359_v17, %v874_v9  ;;  %v748_v12 = vpop.f32.mrb[13].mxu0  ;;  %v876_v13 = vpop.f32.mrb[13].mxu1 }
 0x155   :  { %v749_v14 = vpop.f32.mrb[14].mxu0  ;;  %v877_v15 = vpop.f32.mrb[14].mxu1 }
 0x156   :  { %v1186_v16 = vadd.f32 %v2359_v17, %v749_v14  ;;  %v1218_v18 = vadd.f32 %v2359_v17, %v877_v15  ;;  %v751_v19 = vpop.f32.mrb[15].mxu0  ;;  %v879_v20 = vpop.f32.mrb[15].mxu1  ;;  %v1249_v21 = vmax.f32 %v1185_v10, 0.0  ;;  %v1281_v22 = vmax.f32 %v1217_v11, 0.0 }
 0x158   :  { %v1250_v23 = vmax.f32 %v1186_v16, 0.0  ;;  %v1282_v24 = vmax.f32 %v1218_v18, 0.0 }
 0x15a   :  { %v1872_v25 = vpack.c.bf16 %v1250_v23, %v1249_v21  ;;  %v1952_v26 = vpack.c.bf16 %v1282_v24, %v1281_v22 }
 0x15b   :  { %v754_v27 = vpop.f32.mrb[16].mxu0  ;;  %v882_v28 = vpop.f32.mrb[16].mxu1 }
 0x15c   :  { %2016 = vst [vmem:[#allocation8 + $0x18] sm:$0xff] %v1872_v25   ;;  %2032 = vst [vmem:[#allocation8 + $0x98] sm:$0xff] %v1952_v26   ;;  %v1187_v29 = vadd.f32 %v2359_v17, %v754_v27  ;;  %v1219_v30 = vadd.f32 %v2359_v17, %v882_v28  ;;  %v756_v31 = vpop.f32.mrb[17].mxu0  ;;  %v884_v32 = vpop.f32.mrb[17].mxu1 }
 0x15d   :  { %v757_v33 = vpop.f32.mrb[18].mxu0  ;;  %v885_v34 = vpop.f32.mrb[18].mxu1 }
 0x15e   :  { %v1188_v35 = vadd.f32 %v2359_v17, %v757_v33  ;;  %v1220_v36 = vadd.f32 %v2359_v17, %v885_v34  ;;  %v759_v37 = vpop.f32.mrb[19].mxu0  ;;  %v887_v38 = vpop.f32.mrb[19].mxu1  ;;  %v1251_v39 = vmax.f32 %v1187_v29, 0.0  ;;  %v1283_v40 = vmax.f32 %v1219_v30, 0.0 }
 0x160   :  { %v1252_v41 = vmax.f32 %v1188_v35, 0.0  ;;  %v1284_v42 = vmax.f32 %v1220_v36, 0.0 }
 0x162   :  { %v1877_v43 = vpack.c.bf16 %v1252_v41, %v1251_v39  ;;  %v1957_v44 = vpack.c.bf16 %v1284_v42, %v1283_v40 }
 0x163   :  { %v762_v45 = vpop.f32.mrb[20].mxu0  ;;  %v890_v46 = vpop.f32.mrb[20].mxu1 }
 0x164   :  { %2017 = vst [vmem:[#allocation8 + $0x20] sm:$0xff] %v1877_v43   ;;  %2033 = vst [vmem:[#allocation8 + $0xa0] sm:$0xff] %v1957_v44   ;;  %v1189_v47 = vadd.f32 %v2359_v17, %v762_v45  ;;  %v1221_v48 = vadd.f32 %v2359_v17, %v890_v46  ;;  %v764_v49 = vpop.f32.mrb[21].mxu0  ;;  %v892_v50 = vpop.f32.mrb[21].mxu1 }
 0x165   :  { %v765_v51 = vpop.f32.mrb[22].mxu0  ;;  %v893_v52 = vpop.f32.mrb[22].mxu1 }
 0x166   :  { %v1190_v53 = vadd.f32 %v2359_v17, %v765_v51  ;;  %v1222_v54 = vadd.f32 %v2359_v17, %v893_v52  ;;  %v767_v55 = vpop.f32.mrb[23].mxu0  ;;  %v895_v56 = vpop.f32.mrb[23].mxu1  ;;  %v1253_v57 = vmax.f32 %v1189_v47, 0.0  ;;  %v1285_v58 = vmax.f32 %v1221_v48, 0.0 }
 0x168   :  { %v1254_v59 = vmax.f32 %v1190_v53, 0.0  ;;  %v1286_v60 = vmax.f32 %v1222_v54, 0.0 }
 0x16a   :  { %v1882_v61 = vpack.c.bf16 %v1254_v59, %v1253_v57  ;;  %v1962_v62 = vpack.c.bf16 %v1286_v60, %v1285_v58 }
 0x16b   :  { %v770_v63 = vpop.f32.mrb[24].mxu0  ;;  %v898_v0 = vpop.f32.mrb[24].mxu1 }
 0x16c   :  { %2018 = vst [vmem:[#allocation8 + $0x28] sm:$0xff] %v1882_v61   ;;  %2034 = vst [vmem:[#allocation8 + $0xa8] sm:$0xff] %v1962_v62   ;;  %v1191_v1 = vadd.f32 %v2359_v17, %v770_v63  ;;  %v1223_v2 = vadd.f32 %v2359_v17, %v898_v0  ;;  %v772_v3 = vpop.f32.mrb[25].mxu0  ;;  %v900_v4 = vpop.f32.mrb[25].mxu1 }
 0x16d   :  { %v773_v5 = vpop.f32.mrb[26].mxu0  ;;  %v901_v6 = vpop.f32.mrb[26].mxu1 }
 0x16e   :  { %v1192_v7 = vadd.f32 %v2359_v17, %v773_v5  ;;  %v1224_v8 = vadd.f32 %v2359_v17, %v901_v6  ;;  %v775_v9 = vpop.f32.mrb[27].mxu0  ;;  %v903_v10 = vpop.f32.mrb[27].mxu1  ;;  %v1255_v11 = vmax.f32 %v1191_v1, 0.0  ;;  %v1287_v12 = vmax.f32 %v1223_v2, 0.0 }
 0x170   :  { %v1256_v13 = vmax.f32 %v1192_v7, 0.0  ;;  %v1288_v14 = vmax.f32 %v1224_v8, 0.0 }
 0x172   :  { %v1887_v15 = vpack.c.bf16 %v1256_v13, %v1255_v11  ;;  %v1967_v16 = vpack.c.bf16 %v1288_v14, %v1287_v12 }
 0x173   :  { %v778_v18 = vpop.f32.mrb[28].mxu0  ;;  %v906_v19 = vpop.f32.mrb[28].mxu1 }
 0x174   :  { %2019 = vst [vmem:[#allocation8 + $0x30] sm:$0xff] %v1887_v15   ;;  %2035 = vst [vmem:[#allocation8 + $0xb0] sm:$0xff] %v1967_v16   ;;  %v1193_v20 = vadd.f32 %v2359_v17, %v778_v18  ;;  %v1225_v21 = vadd.f32 %v2359_v17, %v906_v19  ;;  %v780_v22 = vpop.f32.mrb[29].mxu0  ;;  %v908_v23 = vpop.f32.mrb[29].mxu1 }
 0x175   :  { %v781_v24 = vpop.f32.mrb[30].mxu0  ;;  %v909_v25 = vpop.f32.mrb[30].mxu1 }
 0x176   :  { %v1194_v26 = vadd.f32 %v2359_v17, %v781_v24  ;;  %v1226_v27 = vadd.f32 %v2359_v17, %v909_v25  ;;  %v783_v28 = vpop.f32.mrb[31].mxu0  ;;  %v911_v29 = vpop.f32.mrb[31].mxu1  ;;  %v1257_v30 = vmax.f32 %v1193_v20, 0.0  ;;  %v1289_v31 = vmax.f32 %v1225_v21, 0.0 }
 0x178   :  { %v1258_v32 = vmax.f32 %v1194_v26, 0.0  ;;  %v1290_v33 = vmax.f32 %v1226_v27, 0.0 }
 0x17a   :  { %v1892_v34 = vpack.c.bf16 %v1258_v32, %v1257_v30  ;;  %v1972_v35 = vpack.c.bf16 %v1290_v33, %v1289_v31 }
 0x17b   :  { %v786_v36 = vpop.f32.mrb[32].mxu0  ;;  %v914_v37 = vpop.f32.mrb[32].mxu1 }
 0x17c   :  { %2020 = vst [vmem:[#allocation8 + $0x38] sm:$0xff] %v1892_v34   ;;  %2036 = vst [vmem:[#allocation8 + $0xb8] sm:$0xff] %v1972_v35   ;;  %v1195_v38 = vadd.f32 %v2359_v17, %v786_v36  ;;  %v1227_v39 = vadd.f32 %v2359_v17, %v914_v37  ;;  %v788_v40 = vpop.f32.mrb[33].mxu0  ;;  %v916_v41 = vpop.f32.mrb[33].mxu1 }
 0x17d   :  { %v789_v42 = vpop.f32.mrb[34].mxu0  ;;  %v917_v43 = vpop.f32.mrb[34].mxu1 }
 0x17e   :  { %v1196_v44 = vadd.f32 %v2359_v17, %v789_v42  ;;  %v1228_v45 = vadd.f32 %v2359_v17, %v917_v43  ;;  %v791_v46 = vpop.f32.mrb[35].mxu0  ;;  %v919_v47 = vpop.f32.mrb[35].mxu1  ;;  %v1259_v48 = vmax.f32 %v1195_v38, 0.0  ;;  %v1291_v49 = vmax.f32 %v1227_v39, 0.0 }
 0x180   :  { %v1260_v50 = vmax.f32 %v1196_v44, 0.0  ;;  %v1292_v51 = vmax.f32 %v1228_v45, 0.0 }
 0x182   :  { %v1897_v52 = vpack.c.bf16 %v1260_v50, %v1259_v48  ;;  %v1977_v53 = vpack.c.bf16 %v1292_v51, %v1291_v49 }
 0x183   :  { %v794_v54 = vpop.f32.mrb[36].mxu0  ;;  %v922_v55 = vpop.f32.mrb[36].mxu1 }
 0x184   :  { %2021 = vst [vmem:[#allocation8 + $0x40] sm:$0xff] %v1897_v52   ;;  %2037 = vst [vmem:[#allocation8 + $0xc0] sm:$0xff] %v1977_v53   ;;  %v1197_v56 = vadd.f32 %v2359_v17, %v794_v54  ;;  %v1229_v57 = vadd.f32 %v2359_v17, %v922_v55  ;;  %v796_v58 = vpop.f32.mrb[37].mxu0  ;;  %v924_v59 = vpop.f32.mrb[37].mxu1 }
 0x185   :  { %v797_v60 = vpop.f32.mrb[38].mxu0  ;;  %v925_v61 = vpop.f32.mrb[38].mxu1 }
 0x186   :  { %v1198_v62 = vadd.f32 %v2359_v17, %v797_v60  ;;  %v1230_v63 = vadd.f32 %v2359_v17, %v925_v61  ;;  %v799_v0 = vpop.f32.mrb[39].mxu0  ;;  %v927_v1 = vpop.f32.mrb[39].mxu1  ;;  %v1261_v2 = vmax.f32 %v1197_v56, 0.0  ;;  %v1293_v3 = vmax.f32 %v1229_v57, 0.0 }
 0x188   :  { %v1262_v4 = vmax.f32 %v1198_v62, 0.0  ;;  %v1294_v5 = vmax.f32 %v1230_v63, 0.0 }
 0x18a   :  { %v1902_v6 = vpack.c.bf16 %v1262_v4, %v1261_v2  ;;  %v1982_v7 = vpack.c.bf16 %v1294_v5, %v1293_v3 }
 0x18b   :  { %v802_v8 = vpop.f32.mrb[40].mxu0  ;;  %v930_v9 = vpop.f32.mrb[40].mxu1 }
 0x18c   :  { %2022 = vst [vmem:[#allocation8 + $0x48] sm:$0xff] %v1902_v6   ;;  %2038 = vst [vmem:[#allocation8 + $0xc8] sm:$0xff] %v1982_v7   ;;  %v1199_v10 = vadd.f32 %v2359_v17, %v802_v8  ;;  %v1231_v11 = vadd.f32 %v2359_v17, %v930_v9  ;;  %v804_v12 = vpop.f32.mrb[41].mxu0  ;;  %v932_v13 = vpop.f32.mrb[41].mxu1 }
 0x18d   :  { %v805_v14 = vpop.f32.mrb[42].mxu0  ;;  %v933_v15 = vpop.f32.mrb[42].mxu1 }
 0x18e   :  { %v1200_v16 = vadd.f32 %v2359_v17, %v805_v14  ;;  %v1232_v18 = vadd.f32 %v2359_v17, %v933_v15  ;;  %v807_v19 = vpop.f32.mrb[43].mxu0  ;;  %v935_v20 = vpop.f32.mrb[43].mxu1  ;;  %v1263_v21 = vmax.f32 %v1199_v10, 0.0  ;;  %v1295_v22 = vmax.f32 %v1231_v11, 0.0 }
 0x190   :  { %v1264_v23 = vmax.f32 %v1200_v16, 0.0  ;;  %v1296_v24 = vmax.f32 %v1232_v18, 0.0 }
 0x192   :  { %v1907_v25 = vpack.c.bf16 %v1264_v23, %v1263_v21  ;;  %v1987_v26 = vpack.c.bf16 %v1296_v24, %v1295_v22 }
 0x193   :  { %v810_v27 = vpop.f32.mrb[44].mxu0  ;;  %v938_v28 = vpop.f32.mrb[44].mxu1 }
 0x194   :  { %2023 = vst [vmem:[#allocation8 + $0x50] sm:$0xff] %v1907_v25   ;;  %2039 = vst [vmem:[#allocation8 + $0xd0] sm:$0xff] %v1987_v26   ;;  %v1201_v29 = vadd.f32 %v2359_v17, %v810_v27  ;;  %v1233_v30 = vadd.f32 %v2359_v17, %v938_v28  ;;  %v812_v31 = vpop.f32.mrb[45].mxu0  ;;  %v940_v32 = vpop.f32.mrb[45].mxu1 }
 0x195   :  { %v813_v33 = vpop.f32.mrb[46].mxu0  ;;  %v941_v34 = vpop.f32.mrb[46].mxu1 }
 0x196   :  { %v1202_v35 = vadd.f32 %v2359_v17, %v813_v33  ;;  %v1234_v36 = vadd.f32 %v2359_v17, %v941_v34  ;;  %v815_v37 = vpop.f32.mrb[47].mxu0  ;;  %v943_v38 = vpop.f32.mrb[47].mxu1  ;;  %v1265_v39 = vmax.f32 %v1201_v29, 0.0  ;;  %v1297_v40 = vmax.f32 %v1233_v30, 0.0 }
 0x198   :  { %v1266_v41 = vmax.f32 %v1202_v35, 0.0  ;;  %v1298_v42 = vmax.f32 %v1234_v36, 0.0 }
 0x19a   :  { %v1912_v43 = vpack.c.bf16 %v1266_v41, %v1265_v39  ;;  %v1992_v44 = vpack.c.bf16 %v1298_v42, %v1297_v40 }
 0x19b   :  { %v818_v45 = vpop.f32.mrb[48].mxu0  ;;  %v946_v46 = vpop.f32.mrb[48].mxu1 }
 0x19c   :  { %2024 = vst [vmem:[#allocation8 + $0x58] sm:$0xff] %v1912_v43   ;;  %2040 = vst [vmem:[#allocation8 + $0xd8] sm:$0xff] %v1992_v44   ;;  %v1203_v47 = vadd.f32 %v2359_v17, %v818_v45  ;;  %v1235_v48 = vadd.f32 %v2359_v17, %v946_v46  ;;  %v820_v49 = vpop.f32.mrb[49].mxu0  ;;  %v948_v50 = vpop.f32.mrb[49].mxu1 }
 0x19d   :  { %v821_v51 = vpop.f32.mrb[50].mxu0  ;;  %v949_v52 = vpop.f32.mrb[50].mxu1 }
 0x19e   :  { %v1204_v53 = vadd.f32 %v2359_v17, %v821_v51  ;;  %v1236_v54 = vadd.f32 %v2359_v17, %v949_v52  ;;  %v823_v55 = vpop.f32.mrb[51].mxu0  ;;  %v951_v56 = vpop.f32.mrb[51].mxu1  ;;  %v1267_v57 = vmax.f32 %v1203_v47, 0.0  ;;  %v1299_v58 = vmax.f32 %v1235_v48, 0.0 }
 0x1a0   :  { %v1268_v59 = vmax.f32 %v1204_v53, 0.0  ;;  %v1300_v60 = vmax.f32 %v1236_v54, 0.0 }
 0x1a2   :  { %v1917_v61 = vpack.c.bf16 %v1268_v59, %v1267_v57  ;;  %v1997_v62 = vpack.c.bf16 %v1300_v60, %v1299_v58 }
 0x1a3   :  { %v826_v63 = vpop.f32.mrb[52].mxu0  ;;  %v954_v0 = vpop.f32.mrb[52].mxu1 }
 0x1a4   :  { %2025 = vst [vmem:[#allocation8 + $0x60] sm:$0xff] %v1917_v61   ;;  %2041 = vst [vmem:[#allocation8 + $0xe0] sm:$0xff] %v1997_v62   ;;  %v1205_v1 = vadd.f32 %v2359_v17, %v826_v63  ;;  %v1237_v2 = vadd.f32 %v2359_v17, %v954_v0  ;;  %v828_v3 = vpop.f32.mrb[53].mxu0  ;;  %v956_v4 = vpop.f32.mrb[53].mxu1 }
 0x1a5   :  { %v829_v5 = vpop.f32.mrb[54].mxu0  ;;  %v957_v6 = vpop.f32.mrb[54].mxu1 }
 0x1a6   :  { %v1206_v7 = vadd.f32 %v2359_v17, %v829_v5  ;;  %v1238_v8 = vadd.f32 %v2359_v17, %v957_v6  ;;  %v831_v9 = vpop.f32.mrb[55].mxu0  ;;  %v959_v10 = vpop.f32.mrb[55].mxu1  ;;  %v1269_v11 = vmax.f32 %v1205_v1, 0.0  ;;  %v1301_v12 = vmax.f32 %v1237_v2, 0.0 }
 0x1a8   :  { %v1270_v13 = vmax.f32 %v1206_v7, 0.0  ;;  %v1302_v14 = vmax.f32 %v1238_v8, 0.0 }
 0x1aa   :  { %v1922_v15 = vpack.c.bf16 %v1270_v13, %v1269_v11  ;;  %v2002_v16 = vpack.c.bf16 %v1302_v14, %v1301_v12 }
 0x1ab   :  { %v834_v18 = vpop.f32.mrb[56].mxu0  ;;  %v962_v19 = vpop.f32.mrb[56].mxu1 }
 0x1ac   :  { %2026 = vst [vmem:[#allocation8 + $0x68] sm:$0xff] %v1922_v15   ;;  %2042 = vst [vmem:[#allocation8 + $0xe8] sm:$0xff] %v2002_v16   ;;  %v1207_v20 = vadd.f32 %v2359_v17, %v834_v18  ;;  %v1239_v21 = vadd.f32 %v2359_v17, %v962_v19  ;;  %v836_v22 = vpop.f32.mrb[57].mxu0  ;;  %v964_v23 = vpop.f32.mrb[57].mxu1 }
 0x1ad   :  { %v837_v24 = vpop.f32.mrb[58].mxu0  ;;  %v965_v25 = vpop.f32.mrb[58].mxu1 }
 0x1ae   :  { %v1208_v26 = vadd.f32 %v2359_v17, %v837_v24  ;;  %v1240_v27 = vadd.f32 %v2359_v17, %v965_v25  ;;  %v839_v28 = vpop.f32.mrb[59].mxu0  ;;  %v967_v29 = vpop.f32.mrb[59].mxu1  ;;  %v1271_v30 = vmax.f32 %v1207_v20, 0.0  ;;  %v1303_v31 = vmax.f32 %v1239_v21, 0.0 }
 0x1b0   :  { %v1272_v32 = vmax.f32 %v1208_v26, 0.0  ;;  %v1304_v33 = vmax.f32 %v1240_v27, 0.0 }
 0x1b2   :  { %v1927_v34 = vpack.c.bf16 %v1272_v32, %v1271_v30  ;;  %v2007_v35 = vpack.c.bf16 %v1304_v33, %v1303_v31 }
 0x1b3   :  { %v842_v36 = vpop.f32.mrb[60].mxu0  ;;  %v970_v37 = vpop.f32.mrb[60].mxu1 }
 0x1b4   :  { %2027 = vst [vmem:[#allocation8 + $0x70] sm:$0xff] %v1927_v34   ;;  %2043 = vst [vmem:[#allocation8 + $0xf0] sm:$0xff] %v2007_v35   ;;  %v1209_v38 = vadd.f32 %v2359_v17, %v842_v36  ;;  %v1241_v39 = vadd.f32 %v2359_v17, %v970_v37  ;;  %v844_v40 = vpop.f32.mrb[61].mxu0  ;;  %v972_v41 = vpop.f32.mrb[61].mxu1 }
 0x1b5   :  { %v845_v42 = vpop.f32.mrb[62].mxu0  ;;  %v973_v43 = vpop.f32.mrb[62].mxu1 }
 0x1b6   :  { %v1210_v44 = vadd.f32 %v2359_v17, %v845_v42  ;;  %v1242_v45 = vadd.f32 %v2359_v17, %v973_v43  ;;  %v847_v46 = vpop.f32.mrb[63].mxu0  ;;  %v975_v47 = vpop.f32.mrb[63].mxu1  ;;  %v1273_v48 = vmax.f32 %v1209_v38, 0.0  ;;  %v1305_v49 = vmax.f32 %v1241_v39, 0.0 }
 0x1b8   :  { %v1274_v50 = vmax.f32 %v1210_v44, 0.0  ;;  %v1306_v51 = vmax.f32 %v1242_v45, 0.0 }
 0x1ba   :  { %v1932_v52 = vpack.c.bf16 %v1274_v50, %v1273_v48  ;;  %v2012_v53 = vpack.c.bf16 %v1306_v51, %v1305_v49 }
 0x1bc   :  { %2028 = vst [vmem:[#allocation8 + $0x78] sm:$0xff] %v1932_v52   ;;  %2044 = vst [vmem:[#allocation8 + $0xf8] sm:$0xff] %v2012_v53  }
 0x1bd   :  { %2252 = shalt.err (!%p2249_p6)
}
 0x1be   :  { %s2253_s17 = scalar_lea.hbm %s2443_s3, 4096 }
 0x1bf   :  { %p2254_p7 = scmp.ne.s32.totalorder %s2443_s3, %s2253_s17  ;;  %p2257_p8 = scmp.lt.u32.totalorder %s2253_s17, %s2443_s3 }
 0x1c1   :  { %p2259_p9 = pnand %p2257_p8, %p2254_p7 }
 0x1c3   :  { %2262 = shalt.err (!%p2259_p9)
}
 0x1c4   :  { %1638 = dma.vmem_to_hbm [thread:$0]  %s1633_s13, 4096, %s2443_s3, [#allocation5], %s2273_s0, %s2273_s0, %s2274_s9  }
 0x1c5   :  { %2267 = dma.done.wait [#allocation5], 4096  }
 0x1c6   :  { %2268 = vsyncadd [#allocation5], 4294963200 }
 0x1c7   :  { %1642 = vsyncpa [#allocation4], 1 }
 0x1c8   :  { %1643 = vsyncpa [#allocation7], 1 }
 0x1c9   :  { %1644 = vsyncpa [#allocation5], 1 }

</bundles_post_ra>
